<compile_context>
chip_gen: v7x
topology: tpu7x:2x2x1
jax: 0.10.0
libtpu: 0.0.40
codegen_flags: <defaults>
</compile_context>

<pallas_src>
import functools

import jax
import jax.numpy as jnp
from jax.experimental import pallas as pl
from jax.experimental.pallas import tpu as pltpu


def _round_up(x, m):
    return ((x + m - 1) // m) * m


def mlp_kernel(x_ref, w1_ref, b1_ref, w2_ref, b2_ref, o_ref):
    # x:  (tb, in_dim)        f32  -> cast to bf16 in-kernel (hidden under DMA/MXU)
    # w1: (in_dim, hidden)    bf16 (pre-transposed, VMEM-resident)
    # b1: (1, hidden)         f32
    # w2: (hidden, out_pad)   bf16 (pre-transposed, zero-padded cols, VMEM-resident)
    # b2: (1, out_pad)        f32
    # o:  (tb, out_pad)       f32
    x = x_ref[...].astype(jnp.bfloat16)
    h = jnp.dot(x, w1_ref[...], preferred_element_type=jnp.float32)
    h = jnp.maximum(h + b1_ref[...], 0.0)                 # bias + ReLU in f32
    out = jnp.dot(h.astype(jnp.bfloat16), w2_ref[...],
                  preferred_element_type=jnp.float32)
    o_ref[...] = (out + b2_ref[...]).astype(o_ref.dtype)


def prepare_params(w1, b1, w2, b2):
    """One-time parameter setup (NOT in the forward hot path).

    Pre-transposes weights to (in, out) layout for canonical MXU matmuls,
    casts them to bf16, and lane-pads out_dim up to a multiple of 128 so the
    kernel's output store is lane-dense (wrapper slices back to out_dim).
    """
    out_dim, hidden = w2.shape
    out_pad = max(128, _round_up(out_dim, 128))
    w2_p = jnp.zeros((out_pad, hidden), w2.dtype).at[:out_dim].set(w2)
    b2_p = jnp.zeros((out_pad,), b2.dtype).at[:out_dim].set(b2)
    return {
        "w1": w1.T.astype(jnp.bfloat16),                   # (in_dim, hidden)
        "b1": b1.reshape(1, -1).astype(jnp.float32),       # (1, hidden)
        "w2": w2_p.T.astype(jnp.bfloat16),                 # (hidden, out_pad)
        "b2": b2_p.reshape(1, -1).astype(jnp.float32),     # (1, out_pad)
        "out_dim": out_dim,
    }


@functools.partial(jax.jit, static_argnames=("out_dim", "batch_tile"))
def _forward_impl(x_nchw, w1, b1, w2, b2, *, out_dim, batch_tile=512):
    B = x_nchw.shape[0]
    x_flat = x_nchw.reshape(B, -1)                         # free layout collapse, stays f32
    in_dim = x_flat.shape[1]
    hidden = w1.shape[1]
    out_pad = w2.shape[1]

    # Batch tile: multiple of 8 sublanes, capped at batch_tile rows per step.
    tb = min(batch_tile, _round_up(B, 8))
    # Give the "parallel" batch axis >= 2 grid steps when B allows it so a
    # 2-TC chip (v7x) can split the work across both TensorCores.
    if B > 8:
        tb = min(tb, _round_up(-(-B // 2), 8))
    grid = (pl.cdiv(B, tb),)                               # ragged last block is masked

    flops = 2 * B * (in_dim * hidden + hidden * out_pad)
    bytes_accessed = (
        x_flat.size * 4 + w1.size * 2 + w2.size * 2
        + b1.size * 4 + b2.size * 4 + B * out_pad * 4
    )

    out = pl.pallas_call(
        mlp_kernel,
        out_shape=jax.ShapeDtypeStruct((B, out_pad), jnp.float32),
        grid=grid,
        in_specs=[
            pl.BlockSpec((tb, in_dim), lambda i: (i, 0)),      # batch-tiled x (f32)
            pl.BlockSpec((in_dim, hidden), lambda i: (0, 0)),  # VMEM-resident
            pl.BlockSpec((1, hidden), lambda i: (0, 0)),       # VMEM-resident
            pl.BlockSpec((hidden, out_pad), lambda i: (0, 0)), # VMEM-resident
            pl.BlockSpec((1, out_pad), lambda i: (0, 0)),      # VMEM-resident
        ],
        out_specs=pl.BlockSpec((tb, out_pad), lambda i: (i, 0)),
        compiler_params=pltpu.CompilerParams(
            dimension_semantics=("parallel",)),
        cost_estimate=pl.CostEstimate(
            flops=flops, transcendentals=0, bytes_accessed=bytes_accessed),
    )(x_flat, w1, b1, w2, b2)

    # Only the out_dim slice is real; padded lanes are dropped here (cheap:
    # reads 128 cols, writes out_dim cols, and can fuse into the consumer).
    return out[:, :out_dim]


def network1_forward(x_nchw, params, *, batch_tile=512):
    """Pallas implementation of Network1.forward. Returns (B, out_dim) f32."""
    return _forward_impl(
        x_nchw, params["w1"], params["b1"], params["w2"], params["b2"],
        out_dim=params["out_dim"], batch_tile=batch_tile,
    )


def reference_forward(x_nchw, w1, b1, w2, b2):
    x = x_nchw.reshape(x_nchw.shape[0], -1)
    h = jnp.maximum(x @ w1.T + b1, 0.0)
    return h @ w2.T + b2


if __name__ == "__main__":
    # Small shapes consistent with the module: flatten(B, C, H, W) -> in_dim.
    B, C, H, W = 8, 1, 16, 16
    in_dim = C * H * W          # 256
    hidden1 = 128
    out_dim = 10

    key = jax.random.PRNGKey(0)
    kx, kw1, kb1, kw2, kb2 = jax.random.split(key, 5)

    x = jax.random.normal(kx, (B, C, H, W), dtype=jnp.float32)
    # PyTorch nn.Linear shapes: weight (out, in), bias (out,).
    w1 = jax.random.normal(kw1, (hidden1, in_dim), dtype=jnp.float32) * 0.05
    b1 = jax.random.normal(kb1, (hidden1,), dtype=jnp.float32) * 0.05
    w2 = jax.random.normal(kw2, (out_dim, hidden1), dtype=jnp.float32) * 0.05
    b2 = jax.random.normal(kb2, (out_dim,), dtype=jnp.float32) * 0.05

    params = prepare_params(w1, b1, w2, b2)        # one-time setup cost

    out = network1_forward(x, params)
    out = jax.block_until_ready(out)

    ref = reference_forward(x, w1, b1, w2, b2)     # pure f32 reference
    assert out.shape == (B, out_dim)
    # bf16 matmul inputs (f32 accumulation) -> loosened tolerance vs f32 ref.
    assert jnp.allclose(out, ref, atol=2e-2, rtol=2e-2)
    print("KERNEL_OK")
</pallas_src>

<mosaic_0001>
module attributes {stable_mosaic.version = 11 : i64} {
  func.func @mlp_kernel(%arg0: i32, %arg1: memref<8x256xf32, #tpu.memory_space<vmem>>, %arg2: memref<256x128xbf16, #tpu.memory_space<vmem>>, %arg3: memref<1x128xf32, #tpu.memory_space<vmem>>, %arg4: memref<128x128xbf16, #tpu.memory_space<vmem>>, %arg5: memref<1x128xf32, #tpu.memory_space<vmem>>, %arg6: memref<8x128xf32, #tpu.memory_space<vmem>>) attributes {dimension_semantics = [#tpu.dimension_semantics<parallel>], iteration_bounds = array<i64: 1>, scalar_prefetch = 0 : i64, scratch_operands = 0 : i64, tpu.core_type = #tpu.core_type<tc>, window_params = [{transform_indices = @transform_0, window_bounds = array<i64: 8, 256>}, {pipeline_mode = #tpu.pipeline_mode<synchronous>, transform_indices = @transform_1, window_bounds = array<i64: 256, 128>}, {pipeline_mode = #tpu.pipeline_mode<synchronous>, transform_indices = @transform_2, window_bounds = array<i64: 1, 128>}, {pipeline_mode = #tpu.pipeline_mode<synchronous>, transform_indices = @transform_3, window_bounds = array<i64: 128, 128>}, {pipeline_mode = #tpu.pipeline_mode<synchronous>, transform_indices = @transform_4, window_bounds = array<i64: 1, 128>}, {transform_indices = @transform_5, window_bounds = array<i64: 8, 128>}]} {
    %c0 = arith.constant 0 : index
    %c0_0 = arith.constant 0 : index
    %0 = vector.load %arg1[%c0, %c0_0] : memref<8x256xf32, #tpu.memory_space<vmem>>, vector<8x256xf32>
    %1 = arith.truncf %0 : vector<8x256xf32> to vector<8x256xbf16>
    %c0_1 = arith.constant 0 : index
    %c0_2 = arith.constant 0 : index
    %2 = vector.load %arg2[%c0_1, %c0_2] : memref<256x128xbf16, #tpu.memory_space<vmem>>, vector<256x128xbf16>
    %cst = arith.constant dense<0.000000e+00> : vector<8x128xf32>
    %3 = tpu.matmul %1, %2, %cst {dimension_numbers = #tpu.dot_dimension_numbers<[1], [0], [0], [1], [0, 0, 1, 1], [], []>} : vector<8x256xbf16>, vector<256x128xbf16>, vector<8x128xf32> -> vector<8x128xf32>
    %c0_3 = arith.constant 0 : index
    %c0_4 = arith.constant 0 : index
    %4 = vector.load %arg3[%c0_3, %c0_4] : memref<1x128xf32, #tpu.memory_space<vmem>>, vector<1x128xf32>
    %5 = vector.broadcast %4 : vector<1x128xf32> to vector<8x128xf32>
    %6 = arith.addf %3, %5 : vector<8x128xf32>
    %cst_5 = arith.constant 0.000000e+00 : f32
    %7 = vector.broadcast %cst_5 : f32 to vector<8x128xf32>
    %8 = arith.maximumf %6, %7 : vector<8x128xf32>
    %9 = arith.truncf %8 : vector<8x128xf32> to vector<8x128xbf16>
    %c0_6 = arith.constant 0 : index
    %c0_7 = arith.constant 0 : index
    %10 = vector.load %arg4[%c0_6, %c0_7] : memref<128x128xbf16, #tpu.memory_space<vmem>>, vector<128x128xbf16>
    %cst_8 = arith.constant dense<0.000000e+00> : vector<8x128xf32>
    %11 = tpu.matmul %9, %10, %cst_8 {dimension_numbers = #tpu.dot_dimension_numbers<[1], [0], [0], [1], [0, 0, 1, 1], [], []>} : vector<8x128xbf16>, vector<128x128xbf16>, vector<8x128xf32> -> vector<8x128xf32>
    %c0_9 = arith.constant 0 : index
    %c0_10 = arith.constant 0 : index
    %12 = vector.load %arg5[%c0_9, %c0_10] : memref<1x128xf32, #tpu.memory_space<vmem>>, vector<1x128xf32>
    %13 = vector.broadcast %12 : vector<1x128xf32> to vector<8x128xf32>
    %14 = arith.addf %11, %13 : vector<8x128xf32>
    %c0_11 = arith.constant 0 : index
    %c0_12 = arith.constant 0 : index
    %15 = vector.load %arg6[%c0_11, %c0_12] : memref<8x128xf32, #tpu.memory_space<vmem>>, vector<8x128xf32>
    tpu.vector_store %arg6[%c0_11, %c0_12], %14 {strides = array<i32>} : memref<8x128xf32, #tpu.memory_space<vmem>>, vector<8x128xf32>,
    return
  }
  func.func @transform_0(%arg0: i32) -> (i32, i32) {
    %c0_i32 = arith.constant 0 : i32
    %c0_i32_0 = arith.constant 0 : i32
    return %arg0, %c0_i32 : i32, i32
  }
  func.func @transform_1(%arg0: i32) -> (i32, i32) {
    %c0_i32 = arith.constant 0 : i32
    %c0_i32_0 = arith.constant 0 : i32
    %c0_i32_1 = arith.constant 0 : i32
    return %c0_i32, %c0_i32_0 : i32, i32
  }
  func.func @transform_2(%arg0: i32) -> (i32, i32) {
    %c0_i32 = arith.constant 0 : i32
    %c0_i32_0 = arith.constant 0 : i32
    %c0_i32_1 = arith.constant 0 : i32
    return %c0_i32, %c0_i32_0 : i32, i32
  }
  func.func @transform_3(%arg0: i32) -> (i32, i32) {
    %c0_i32 = arith.constant 0 : i32
    %c0_i32_0 = arith.constant 0 : i32
    %c0_i32_1 = arith.constant 0 : i32
    return %c0_i32, %c0_i32_0 : i32, i32
  }
  func.func @transform_4(%arg0: i32) -> (i32, i32) {
    %c0_i32 = arith.constant 0 : i32
    %c0_i32_0 = arith.constant 0 : i32
    %c0_i32_1 = arith.constant 0 : i32
    return %c0_i32, %c0_i32_0 : i32, i32
  }
  func.func @transform_5(%arg0: i32) -> (i32, i32) {
    %c0_i32 = arith.constant 0 : i32
    %c0_i32_0 = arith.constant 0 : i32
    return %arg0, %c0_i32 : i32, i32
  }
}

</mosaic_0001>

<bundles_post_ra>
// kernel: _forward_impl.1
= control target key start
LH: loop header
LB: loop body
LE: loop exit
PB: predicated region body
PF: predicated region fallthrough
CT: control target
= control target key end

     0   :  { %10 = vsyncpa [#allocation3], 0  ;;  %s628_s0 = inlined_call_operand.vmem [shape: f32[8,256], index: 0, kind: input, shape index: {}]   ;;  %s629_s1 = inlined_call_operand.vmem [shape: bf16[256,128], index: 1, kind: input, shape index: {}]   ;;  %s630_s2 = inlined_call_operand.vmem [shape: f32[1,128], index: 2, kind: input, shape index: {}]   ;;  %s631_s3 = inlined_call_operand.hbm [shape: bf16[128,128], index: 3, kind: input, shape index: {}]   ;;  %s632_s4 = inlined_call_operand.vmem [shape: f32[1,128], index: 4, kind: input, shape index: {}]   ;;  %s633_s5 = inlined_call_operand.hbm [shape: f32[8,128], index: 5, kind: output, shape index: {}]  }
   0x1   :  { %11 = vsyncpa [#allocation4], 0  ;;  %s499_s18 = smov [#allocation2]   ;;  %s451_s22 = scalar_lea.hbm %s631_s3, 1024 }
   0x2   :  { %s23_s19 = sshll.u32 %s499_s18, 4  ;;  %p452_p0 = scmp.ne.s32.totalorder %s631_s3, %s451_s22  ;;  %s24_s19 = int_to_ptr.vmem [resolvable:$true] %s23_s19 }
   0x3   :  { %p455_p1 = scmp.lt.u32.totalorder %s451_s22, %s631_s3 }
   0x5   :  { %p457_p2 = pnand %p455_p1, %p452_p0 }
   0x7   :  { %460 = shalt.err (!%p457_p2)
}
   0x8   :  { %s461_s27 = scalar_lea.vmem %s24_s19, 1024  ;;  %p466_p4 = scmp.lt.s32.totalorder %s24_s19, %s24_s19 }
   0x9   :  { %p462_p3 = scmp.ne.s32.totalorder %s24_s19, %s461_s27  ;;  %p467_p5 = scmp.lt.s32.totalorder %s461_s27, %s461_s27 }
   0xb   :  { %p468_p6 = por %p467_p5, %p466_p4 }
   0xd   :  { %p469_p7 = pnand %p468_p6, %p462_p3 }
   0xf   :  { %472 = shalt.err (!%p469_p7)
}
  0x10   :  { %s500_s28 = smov 64   ;;  %s501_s29 = smov 4  }
  0x11   :  { %29 = dma.hbm_to_vmem [thread:$0]  %s631_s3, 1024, %s24_s19, [#allocation3], %s500_s28, %s500_s28, %s501_s29  }
  0x12   :  { %495 = dma.done.wait [#allocation3], 1024  }
  0x13   :  { %496 = vsyncadd [#allocation3], 4294966272  ;;  %v502_v0 = vmov 0.0   ;;  %v427_v1 = vld [vmem:[%s629_s1 + $0x40] sm:$0xff]   ;;  %v429_v3 = vld [vmem:[%s629_s1 + $0x48] sm:$0xff]   ;;  %vm503_vm0 = vmmov 0  }
  0x14   :  { %401 = vmatprep.subr.bf16.mxu1 %v502_v0  ;;  %v428_v2 = vld [vmem:[%s629_s1] sm:$0xff]   ;;  %370 = vmatprep.subr.bf16.mxu0 %v427_v1  ;;  %v430_v4 = vld [vmem:[%s629_s1 + $0x8] sm:$0xff]   ;;  %v431_v5 = vld [vmem:[%s629_s1 + $0x50] sm:$0xff]   ;;  %s504_s18 = smov [#allocation5]  }
  0x15   :  { %371 = vmatpush3.bf16.msra.mxu0 %v428_v2  ;;  %v432_v6 = vld [vmem:[%s629_s1 + $0x10] sm:$0xff]   ;;  %v433_v7 = vld [vmem:[%s629_s1 + $0x58] sm:$0xff]   ;;  %v435_v9 = vld [vmem:[%s629_s1 + $0x60] sm:$0xff]   ;;  %417 = vmatprep.mubr.msk.bf16.mxu1 %vm503_vm0, %v502_v0  ;;  %s335_s19 = sshll.u32 %s504_s18, 4  ;;  %s336_s19 = int_to_ptr.vmem [resolvable:$true] %s335_s19 }
  0x16   :  { %372 = vmatprep.subr.bf16.mxu0 %v429_v3  ;;  %v434_v8 = vld [vmem:[%s629_s1 + $0x18] sm:$0xff]   ;;  %v436_v10 = vld [vmem:[%s629_s1 + $0x20] sm:$0xff]   ;;  %v437_v11 = vld [vmem:[%s629_s1 + $0x68] sm:$0xff]   ;;  %p478_p9 = scmp.lt.s32.totalorder %s336_s19, %s336_s19 }
  0x17   :  { %v37_v12 = vld [vmem:[%s628_s0 + $0x8] sm:$0xff]  ;;  %v443_v14 = vld [vmem:[#allocation2] sm:$0xff]   ;;  %v439_v16 = vld [vmem:[%s629_s1 + $0x70] sm:$0xff]  }
  0x18   :  { %v39_v13 = vpack.c.bf16 %v37_v12, %v37_v12  ;;  %v438_v15 = vld [vmem:[%s629_s1 + $0x28] sm:$0xff]   ;;  %402 = vmatpush3.bf16.msra.mxu1 %v443_v14  ;;  %v440_v18 = vld [vmem:[%s629_s1 + $0x30] sm:$0xff]   ;;  %v441_v19 = vld [vmem:[%s629_s1 + $0x78] sm:$0xff]  }
  0x19   :  { %373 = vmatpush3.bf16.msra.mxu0 %v430_v4  ;;  %v444_v17 = vld [vmem:[#allocation2 + $0x8] sm:$0xff]   ;;  %403 = vmatprep.subr.bf16.mxu1 %v502_v0  ;;  %v445_v20 = vld [vmem:[#allocation2 + $0x10] sm:$0xff]   ;;  %v442_v21 = vld [vmem:[%s629_s1 + $0x38] sm:$0xff]  }
  0x1a   :  { %374 = vmatprep.subr.bf16.mxu0 %v431_v5  ;;  %207 = vmatprep.mubr.bf16.mxu0 %v39_v13  ;;  %v36_v22 = vld [vmem:[%s628_s0] sm:$0xff]  ;;  %v446_v23 = vld [vmem:[#allocation2 + $0x18] sm:$0xff]   ;;  %v448_v26 = vld [vmem:[#allocation2 + $0x28] sm:$0xff]  }
  0x1b   :  { %v38_v24 = vpack.c.bf16 %v36_v22, %v36_v22  ;;  %v447_v25 = vld [vmem:[#allocation2 + $0x20] sm:$0xff]   ;;  %v449_v27 = vld [vmem:[#allocation2 + $0x30] sm:$0xff]   ;;  %v450_v28 = vld [vmem:[#allocation2 + $0x38] sm:$0xff]  }
  0x1c   :  { %404 = vmatpush3.bf16.msra.mxu1 %v444_v17  ;;  %v344_v30 = vld [vmem:[%s630_s2] ss:$0 sm:$0xff]  ;;  %s473_s2 = scalar_lea.vmem %s336_s19, 128 }
  0x1d   :  { %375 = vmatpush3.bf16.msra.mxu0 %v432_v6  ;;  %405 = vmatprep.subr.bf16.mxu1 %v502_v0  ;;  %v361_v38 = vld [vmem:[%s632_s4] ss:$0 sm:$0xff]  ;;  %p474_p8 = scmp.ne.s32.totalorder %s336_s19, %s473_s2  ;;  %p479_p10 = scmp.lt.s32.totalorder %s473_s2, %s473_s2 }
  0x1e   :  { %376 = vmatprep.subr.bf16.mxu0 %v433_v7 }
  0x1f   :  { %p480_p11 = por %p479_p10, %p478_p9 }
  0x20   :  { %406 = vmatpush3.bf16.msra.mxu1 %v445_v20 }
  0x21   :  { %377 = vmatpush3.bf16.msra.mxu0 %v434_v8  ;;  %407 = vmatprep.subr.bf16.mxu1 %v502_v0  ;;  %p481_p12 = pnand %p480_p11, %p474_p8 }
  0x22   :  { %378 = vmatprep.subr.bf16.mxu0 %v435_v9 }
  0x24   :  { %408 = vmatpush3.bf16.msra.mxu1 %v446_v23 }
  0x25   :  { %379 = vmatpush3.bf16.msra.mxu0 %v436_v10  ;;  %409 = vmatprep.subr.bf16.mxu1 %v502_v0 }
  0x26   :  { %380 = vmatprep.subr.bf16.mxu0 %v437_v11 }
  0x28   :  { %410 = vmatpush3.bf16.msra.mxu1 %v447_v25 }
  0x29   :  { %381 = vmatpush3.bf16.msra.mxu0 %v438_v15  ;;  %411 = vmatprep.subr.bf16.mxu1 %v502_v0 }
  0x2a   :  { %382 = vmatprep.subr.bf16.mxu0 %v439_v16 }
  0x2c   :  { %412 = vmatpush3.bf16.msra.mxu1 %v448_v26 }
  0x2d   :  { %383 = vmatpush3.bf16.msra.mxu0 %v440_v18  ;;  %413 = vmatprep.subr.bf16.mxu1 %v502_v0 }
  0x2e   :  { %384 = vmatprep.subr.bf16.mxu0 %v441_v19 }
  0x30   :  { %414 = vmatpush3.bf16.msra.mxu1 %v449_v27 }
  0x31   :  { %385 = vmatpush3.bf16.msra.mxu0 %v442_v21  ;;  %415 = vmatprep.subr.bf16.mxu1 %v502_v0 }
  0x34   :  { %208 = vmatmul.mubr.bf16.vlgmr.msra.gmra.mrb[0].mxu0 %v38_v24  ;;  %416 = vmatpush3.bf16.msra.mxu1 %v450_v28 }
 0x107   :  { %v386_v29 = vpop.f32.mrb[0].mxu0 }
 0x108   :  { %v387_v31 = vpop.f32.mrb[1].mxu0 }
 0x109   :  { %v388_v32 = vadd.f32 %v387_v31, %v386_v29  ;;  %v389_v33 = vpop.f32.mrb[2].mxu0 }
 0x10a   :  { %v390_v34 = vpop.f32.mrb[3].mxu0 }
 0x10b   :  { %v210_v35 = vadd.f32 %v388_v32, %v344_v30 }
 0x10d   :  { %v215_v36 = vmax.f32 %v210_v35, 0.0 }
 0x10f   :  { %v216_v37 = vpack.c.bf16 %v215_v36, %v215_v36 }
 0x111   :  { %418 = vmatmul.mubr.bf16.vlgmr.msra.gmra.mrb[0].mxu1 %v216_v37 }
 0x1e4   :  { %v322_v39 = vpop.f32.mrb[0].mxu1 }
 0x1e5   :  { %v323_v40 = vadd.f32 %v361_v38, %v322_v39  ;;  %v419_v41 = vpop.f32.mrb[1].mxu1 }
 0x1e6   :  { %v325_v42 = vpop.f32.mrb[2].mxu1 }
 0x1e7   :  { %328 = vst [vmem:[#allocation5] sm:$0xff] %v323_v40  ;;  %v420_v43 = vpop.f32.mrb[3].mxu1 }
 0x1e8   :  { %484 = shalt.err (!%p481_p12)
}
 0x1e9   :  { %s485_s4 = scalar_lea.hbm %s633_s5, 128 }
 0x1ea   :  { %p486_p13 = scmp.ne.s32.totalorder %s633_s5, %s485_s4  ;;  %p489_p0 = scmp.lt.u32.totalorder %s485_s4, %s633_s5 }
 0x1ec   :  { %p491_p1 = pnand %p489_p0, %p486_p13 }
 0x1ee   :  { %494 = shalt.err (!%p491_p1)
}
 0x1ef   :  { %338 = dma.vmem_to_hbm [thread:$0]  %s336_s19, 128, %s633_s5, [#allocation4]  }
 0x1f0   :  { %497 = dma.done.wait [#allocation4], 128  }
 0x1f1   :  { %498 = vsyncadd [#allocation4], 4294967168 }
 0x1f2   :  { %342 = vsyncpa [#allocation3], 1 }
 0x1f3   :  { %343 = vsyncpa [#allocation4], 1 }

</bundles_post_ra>
